<compile_context>
chip_gen: v7x
topology: tpu7x:2x2x1
jax: 0.10.0
libtpu: 0.0.40
codegen_flags: <defaults>
</compile_context>

<pallas_src>
import functools

import jax
import jax.numpy as jnp
from jax.experimental import pallas as pl
from jax.experimental.pallas import tpu as pltpu

EPS = 1e-5
VMEM_LIMIT = 32 * 1024 * 1024  # safe on v5e/v6e/v7x


# ----------------------------- tiling helpers -----------------------------

def _round_up(x, m):
    return (x + m - 1) // m * m


def _row_tiles(M, cap=256):
    """Row tile TM and padded row count Mp (TM==Mp when a single tile)."""
    TM = cap if M >= cap else _round_up(M, 8)
    return TM, _round_up(M, TM)


def _divisor_tile(n, cap):
    t = min(n, cap)
    while n % t:
        t -= 1
    return t


def _pad_rows(a, rows):
    if a.shape[0] == rows:
        return a
    return jnp.pad(a, ((0, rows - a.shape[0]),) + ((0, 0),) * (a.ndim - 1))


# ----------------------------- Pallas kernels -----------------------------

def _conv_stats_kernel(x_ref, w_ref, b_ref, y_ref, s1_ref, s2_ref, *,
                       m_true, tm, need_mask):
    """Tiled matmul (bf16 MXU, f32 acc) + bias; accumulates BN sum / sum-sq."""
    i = pl.program_id(0)
    y = jnp.dot(x_ref[...], w_ref[...],
                preferred_element_type=jnp.float32) + b_ref[...]
    y_ref[...] = y
    if need_mask:  # exclude zero-padded rows from the statistics
        row = jax.lax.broadcasted_iota(jnp.int32, y.shape, 0) + i * tm
        y = jnp.where(row < m_true, y, 0.0)

    @pl.when(i == 0)
    def _():
        s1_ref[...] = jnp.zeros_like(s1_ref)
        s2_ref[...] = jnp.zeros_like(s2_ref)

    s1_ref[...] += jnp.sum(y, axis=0, keepdims=True)
    s2_ref[...] += jnp.sum(y * y, axis=0, keepdims=True)


def _bn_stats(s1, s2, g, b, count):
    mean = s1 * (1.0 / count)
    var = jnp.maximum(s2 * (1.0 / count) - mean * mean, 0.0)
    scale = jax.lax.rsqrt(var + EPS) * g
    shift = b - mean * scale
    return scale, shift


def _bn_apply_kernel(y_ref, s1_ref, s2_ref, g_ref, b_ref, o_ref, *, count, relu):
    scale, shift = _bn_stats(s1_ref[...], s2_ref[...], g_ref[...], b_ref[...], count)
    out = y_ref[...] * scale + shift
    if relu:
        out = jnp.maximum(out, 0.0)
    o_ref[...] = out


def _bn_add_relu_kernel(y_ref, res_ref, s1_ref, s2_ref, g_ref, b_ref, o_ref, *, count):
    scale, shift = _bn_stats(s1_ref[...], s2_ref[...], g_ref[...], b_ref[...], count)
    o_ref[...] = jnp.maximum(y_ref[...] * scale + shift + res_ref[...], 0.0)


def _bn_relu_mul_kernel(y_ref, h_ref, s1_ref, s2_ref, g_ref, b_ref, o_ref, *, count):
    scale, shift = _bn_stats(s1_ref[...], s2_ref[...], g_ref[...], b_ref[...], count)
    o_ref[...] = jnp.maximum(y_ref[...] * scale + shift, 0.0) * h_ref[...]


def _bn_relu_pool_mul_kernel(y_ref, s1_ref, s2_ref, g_ref, b_ref, h_ref, o_ref, *,
                             count, wo):
    # y: (TR, 2*Wo, 2, C) contiguous view of the conv output; fused
    # BN -> ReLU -> 2x2 max-pool -> mask multiply.
    scale, shift = _bn_stats(s1_ref[...], s2_ref[...], g_ref[...], b_ref[...], count)
    z = jnp.maximum(y_ref[...] * scale + shift, 0.0)   # (TR, 2*Wo, 2, C)
    z = jnp.max(z, axis=2)                             # max over W-window
    z = jnp.maximum(z[:, :wo, :], z[:, wo:, :])        # max over H-window
    o_ref[...] = z * h_ref[...]


def _avgpool_linear_kernel(x_ref, w_ref, b_ref, o_ref):
    # x: (N, H*W, C) -> global average pool -> classifier matmul.
    f = jnp.mean(x_ref[...], axis=1)
    o_ref[...] = jnp.dot(f, w_ref[...],
                         preferred_element_type=jnp.float32) + b_ref[...]


# ----------------------------- call wrappers -----------------------------

def im2col(x_nhwc, k, stride, padding):
    # Patch extraction is layout glue; the contraction runs in the Pallas kernel.
    N, H, W, C = x_nhwc.shape
    xp = jnp.pad(x_nhwc, ((0, 0), (padding, padding), (padding, padding), (0, 0)))
    Ho = (H + 2 * padding - k) // stride + 1
    Wo = (W + 2 * padding - k) // stride + 1
    cols = []
    for ky in range(k):
        for kx in range(k):
            cols.append(xp[:, ky:ky + stride * Ho:stride,
                           kx:kx + stride * Wo:stride, :])
    patches = jnp.concatenate(cols, axis=-1)            # (N, Ho, Wo, k*k*C)
    return patches.reshape(N * Ho * Wo, k * k * C), (N, Ho, Wo)


def conv_forward(x_nhwc, w_flat, bias, k, stride, padding):
    """Conv (im2col matmul, bf16 operands) with fused bias + BN stats outputs."""
    Cout = w_flat.shape[1]
    patches, (N, Ho, Wo) = im2col(x_nhwc.astype(jnp.bfloat16), k, stride, padding)
    M, K = patches.shape
    TM, Mp = _row_tiles(M)
    patches = _pad_rows(patches, Mp)
    wb = w_flat.astype(jnp.bfloat16)
    b2 = (jnp.zeros((Cout,), jnp.float32) if bias is None else bias).reshape(1, Cout)

    kern = functools.partial(_conv_stats_kernel, m_true=M, tm=TM,
                             need_mask=(Mp != M))
    cost = pl.CostEstimate(
        flops=2 * Mp * K * Cout, transcendentals=0,
        bytes_accessed=Mp * K * 2 + K * Cout * 2 + Mp * Cout * 4 + 2 * Cout * 4)

    y, ssum, ssq = pl.pallas_call(
        kern,
        out_shape=(jax.ShapeDtypeStruct((Mp, Cout), jnp.float32),
                   jax.ShapeDtypeStruct((1, Cout), jnp.float32),
                   jax.ShapeDtypeStruct((1, Cout), jnp.float32)),
        grid=(Mp // TM,),
        in_specs=[pl.BlockSpec((TM, K), lambda i: (i, 0)),
                  pl.BlockSpec((K, Cout), lambda i: (0, 0)),
                  pl.BlockSpec((1, Cout), lambda i: (0, 0))],
        out_specs=(pl.BlockSpec((TM, Cout), lambda i: (i, 0)),
                   pl.BlockSpec((1, Cout), lambda i: (0, 0)),
                   pl.BlockSpec((1, Cout), lambda i: (0, 0))),
        compiler_params=pltpu.CompilerParams(
            dimension_semantics=("arbitrary",),   # stats accumulate across M
            vmem_limit_bytes=VMEM_LIMIT),
        cost_estimate=cost,
    )(patches, wb, b2)
    if Mp != M:
        y = y[:M]
    return y, (N, Ho, Wo), ssum, ssq


def _rowwise_call(kernel, row_args, bcast_args):
    """Row-tiled elementwise kernel: grid over M with parallel semantics."""
    M, C = row_args[0].shape
    TM, Mp = _row_tiles(M)
    rows = [_pad_rows(a, Mp) for a in row_args]
    out = pl.pallas_call(
        kernel,
        out_shape=jax.ShapeDtypeStruct((Mp, C), jnp.float32),
        grid=(Mp // TM,),
        in_specs=([pl.BlockSpec((TM, a.shape[1]), lambda i: (i, 0)) for a in rows]
                  + [pl.BlockSpec(b.shape, lambda i: (0, 0)) for b in bcast_args]),
        out_specs=pl.BlockSpec((TM, C), lambda i: (i, 0)),
        compiler_params=pltpu.CompilerParams(
            dimension_semantics=("parallel",),
            vmem_limit_bytes=VMEM_LIMIT),
    )(*rows, *bcast_args)
    return out[:M] if Mp != M else out


def bn_apply(y, ssum, ssq, gamma, beta, *, count, relu):
    kern = functools.partial(_bn_apply_kernel, count=float(count), relu=relu)
    return _rowwise_call(kern, [y],
                         [ssum, ssq, gamma.reshape(1, -1), beta.reshape(1, -1)])


def bn_add_relu(y, ssum, ssq, gamma, beta, res, *, count):
    kern = functools.partial(_bn_add_relu_kernel, count=float(count))
    return _rowwise_call(kern, [y, res],
                         [ssum, ssq, gamma.reshape(1, -1), beta.reshape(1, -1)])


def bn_relu_mul(y, ssum, ssq, gamma, beta, h_flat, *, count):
    kern = functools.partial(_bn_relu_mul_kernel, count=float(count))
    return _rowwise_call(kern, [y, h_flat],
                         [ssum, ssq, gamma.reshape(1, -1), beta.reshape(1, -1)])


def bn_relu_pool_mul(y_flat, ssum, ssq, gamma, beta, h_nhwc, dims, *, count):
    # dims = conv-output (N, H, W); output is pooled (H//2, W//2) * h.
    n, H, W = dims
    C = y_flat.shape[1]
    Ho, Wo = H // 2, W // 2
    R = n * Ho
    y4 = y_flat.reshape(R, 2 * Wo, 2, C)       # contiguous view of (N,H,W,C)
    hr = h_nhwc.reshape(R, Wo, C)
    TR = _divisor_tile(R, 64)
    kern = functools.partial(_bn_relu_pool_mul_kernel, count=float(count), wo=Wo)
    out = pl.pallas_call(
        kern,
        out_shape=jax.ShapeDtypeStruct((R, Wo, C), jnp.float32),
        grid=(R // TR,),
        in_specs=[pl.BlockSpec((TR, 2 * Wo, 2, C), lambda i: (i, 0, 0, 0)),
                  pl.BlockSpec((1, C), lambda i: (0, 0)),
                  pl.BlockSpec((1, C), lambda i: (0, 0)),
                  pl.BlockSpec((1, C), lambda i: (0, 0)),
                  pl.BlockSpec((1, C), lambda i: (0, 0)),
                  pl.BlockSpec((TR, Wo, C), lambda i: (i, 0, 0))],
        out_specs=pl.BlockSpec((TR, Wo, C), lambda i: (i, 0, 0)),
        compiler_params=pltpu.CompilerParams(
            dimension_semantics=("parallel",),
            vmem_limit_bytes=VMEM_LIMIT),
    )(y4, ssum, ssq, gamma.reshape(1, -1), beta.reshape(1, -1), hr)
    return out.reshape(n, Ho, Wo, C)


def avgpool_linear(m_nhwc, w, b):
    N, H, W, C = m_nhwc.shape
    x3 = m_nhwc.reshape(N, H * W, C)           # keep C on the lane axis
    nc = w.shape[1]
    return pl.pallas_call(
        _avgpool_linear_kernel,
        out_shape=jax.ShapeDtypeStruct((N, nc), jnp.float32),
        grid=(1,),
        in_specs=[pl.BlockSpec((N, H * W, C), lambda i: (0, 0, 0)),
                  pl.BlockSpec((C, nc), lambda i: (0, 0)),
                  pl.BlockSpec((1, nc), lambda i: (0, 0))],
        out_specs=pl.BlockSpec((N, nc), lambda i: (0, 0)),
        compiler_params=pltpu.CompilerParams(
            dimension_semantics=("arbitrary",),
            vmem_limit_bytes=VMEM_LIMIT),
    )(x3, w, b.reshape(1, -1))


# ----------------------------- model pieces -----------------------------

def basic_block(x_nhwc, bp):
    # ResNet BasicBlock, expansion = 1.
    N, H, W, Cin = x_nhwc.shape
    stride = bp['stride']
    planes = bp['conv1_w'].shape[1]

    y1, (n, Ho, Wo), s1, q1 = conv_forward(x_nhwc, bp['conv1_w'], None, 3, stride, 1)
    M1 = n * Ho * Wo
    out = bn_apply(y1, s1, q1, bp['bn1_g'], bp['bn1_b'], count=M1, relu=True)
    out_nhwc = out.reshape(n, Ho, Wo, planes)

    y2, _, s2, q2 = conv_forward(out_nhwc, bp['conv2_w'], None, 3, 1, 1)

    if 'sc_w' in bp:
        ysc, _, ss, qs = conv_forward(x_nhwc, bp['sc_w'], None, 1, stride, 0)
        sc = bn_apply(ysc, ss, qs, bp['sc_g'], bp['sc_b'], count=M1, relu=False)
    else:
        sc = x_nhwc.reshape(M1, Cin)

    out2 = bn_add_relu(y2, s2, q2, bp['bn2_g'], bp['bn2_b'], sc, count=M1)
    return out2.reshape(n, Ho, Wo, planes)


def masknet_forward(P, x_nchw, nf):
    x = jnp.transpose(x_nchw, (0, 2, 3, 1)).astype(jnp.float32)  # NCHW -> NHWC

    # slow branch
    y, (n, Ho, Wo), ss, sq = conv_forward(x, P['conv1_w'], None, 3, 1, 1)
    M = n * Ho * Wo
    h = bn_apply(y, ss, sq, P['bn1_g'], P['bn1_b'], count=M,
                 relu=True).reshape(n, Ho, Wo, nf)
    hs = []
    for blocks in P['layers']:
        for bp in blocks:
            h = basic_block(h, bp)
        hs.append(h)
    # (s_feat / simclr / projector heads only matter for non-default flags)

    # fast (mask) branch
    m = x
    for i, fp in enumerate(P['f_convs']):
        y, (n, Ho, Wo), ss, sq = conv_forward(m, fp['w'], fp['b'], 3, 1, 1)
        Mi = n * Ho * Wo
        Cout = fp['w'].shape[1]
        if i == 0:                     # f_conv1: no max-pool
            h_flat = hs[0].reshape(Mi, Cout)
            m = bn_relu_mul(y, ss, sq, fp['g'], fp['bt'], h_flat,
                            count=Mi).reshape(n, Ho, Wo, Cout)
        else:                          # f_conv2..4: fused BN+ReLU+pool+mul
            m = bn_relu_pool_mul(y, ss, sq, fp['g'], fp['bt'], hs[i],
                                 (n, Ho, Wo), count=Mi)

    return avgpool_linear(m, P['lin_w'], P['lin_b'])   # fused pool + classifier


# ----------------------------- parameter init -----------------------------

class KeyGen:
    def __init__(self, key):
        self.key = key

    def __call__(self):
        self.key, k = jax.random.split(self.key)
        return k


def _normal(key, shape, scale=0.1):
    return scale * jax.random.normal(key, shape, jnp.float32)


def init_params(key, nf, num_classes, num_blocks):
    kg = KeyGen(key)
    P = {}
    P['conv1_w'] = _normal(kg(), (9 * 3, nf))
    P['bn1_g'] = jnp.ones((nf,), jnp.float32)
    P['bn1_b'] = jnp.zeros((nf,), jnp.float32)

    in_planes = nf
    plane_list = [nf, 2 * nf, 4 * nf, 8 * nf]
    stride_list = [1, 2, 2, 2]
    layers = []
    for planes, nblk, s0 in zip(plane_list, num_blocks, stride_list):
        blocks = []
        for s in [s0] + [1] * (nblk - 1):
            bp = {
                'stride': s,
                'conv1_w': _normal(kg(), (9 * in_planes, planes)),
                'bn1_g': jnp.ones((planes,), jnp.float32),
                'bn1_b': jnp.zeros((planes,), jnp.float32),
                'conv2_w': _normal(kg(), (9 * planes, planes)),
                'bn2_g': jnp.ones((planes,), jnp.float32),
                'bn2_b': jnp.zeros((planes,), jnp.float32),
            }
            if s != 1 or in_planes != planes:
                bp['sc_w'] = _normal(kg(), (in_planes, planes))
                bp['sc_g'] = jnp.ones((planes,), jnp.float32)
                bp['sc_b'] = jnp.zeros((planes,), jnp.float32)
            blocks.append(bp)
            in_planes = planes
        layers.append(blocks)
    P['layers'] = layers

    f_in = [3, nf, 2 * nf, 4 * nf]
    f_out = [nf, 2 * nf, 4 * nf, 8 * nf]
    P['f_convs'] = []
    for ci, co in zip(f_in, f_out):
        P['f_convs'].append({
            'w': _normal(kg(), (9 * ci, co)),
            'b': _normal(kg(), (co,)),
            'g': jnp.ones((co,), jnp.float32),
            'bt': jnp.zeros((co,), jnp.float32),
        })

    P['lin_w'] = _normal(kg(), (8 * nf, num_classes))
    P['lin_b'] = jnp.zeros((num_classes,), jnp.float32)
    return P


# ----------------------------- main -----------------------------

if __name__ == "__main__":
    nf = 4
    num_classes = 10
    num_blocks = [1, 1, 1, 1]

    key = jax.random.PRNGKey(0)
    kx, kp = jax.random.split(key)
    x = jax.random.normal(kx, (2, 3, 16, 16), jnp.float32)   # NCHW, like PyTorch

    params = init_params(kp, nf, num_classes, num_blocks)
    y = masknet_forward(params, x, nf)
    y = jax.block_until_ready(y)
    assert y.shape == (2, num_classes)
    assert bool(jnp.all(jnp.isfinite(y)))
    print("KERNEL_OK")
</pallas_src>

<mosaic_0001>
module attributes {stable_mosaic.version = 11 : i64} {
  func.func @_conv_stats_kernel(%arg0: i32, %arg1: memref<256x27xbf16, #tpu.memory_space<vmem>>, %arg2: memref<27x4xbf16, #tpu.memory_space<vmem>>, %arg3: memref<1x4xf32, #tpu.memory_space<vmem>>, %arg4: memref<256x4xf32, #tpu.memory_space<vmem>>, %arg5: memref<1x4xf32, #tpu.memory_space<vmem>>, %arg6: memref<1x4xf32, #tpu.memory_space<vmem>>) attributes {dimension_semantics = [#tpu.dimension_semantics<arbitrary>], iteration_bounds = array<i64: 2>, scalar_prefetch = 0 : i64, scratch_operands = 0 : i64, tpu.core_type = #tpu.core_type<tc>, window_params = [{transform_indices = @transform_0, window_bounds = array<i64: 256, 27>}, {pipeline_mode = #tpu.pipeline_mode<synchronous>, transform_indices = @transform_1, window_bounds = array<i64: 27, 4>}, {pipeline_mode = #tpu.pipeline_mode<synchronous>, transform_indices = @transform_2, window_bounds = array<i64: 1, 4>}, {transform_indices = @transform_3, window_bounds = array<i64: 256, 4>}, {pipeline_mode = #tpu.pipeline_mode<synchronous>, transform_indices = @transform_4, window_bounds = array<i64: 1, 4>}, {pipeline_mode = #tpu.pipeline_mode<synchronous>, transform_indices = @transform_5, window_bounds = array<i64: 1, 4>}]} {
    %c0 = arith.constant 0 : index
    %c0_0 = arith.constant 0 : index
    %0 = vector.load %arg1[%c0, %c0_0] : memref<256x27xbf16, #tpu.memory_space<vmem>>, vector<256x27xbf16>
    %c0_1 = arith.constant 0 : index
    %c0_2 = arith.constant 0 : index
    %1 = vector.load %arg2[%c0_1, %c0_2] : memref<27x4xbf16, #tpu.memory_space<vmem>>, vector<27x4xbf16>
    %cst = arith.constant dense<0.000000e+00> : vector<256x4xf32>
    %2 = tpu.matmul %0, %1, %cst {dimension_numbers = #tpu.dot_dimension_numbers<[1], [0], [0], [1], [0, 0, 1, 1], [], []>} : vector<256x27xbf16>, vector<27x4xbf16>, vector<256x4xf32> -> vector<256x4xf32>
    %c0_3 = arith.constant 0 : index
    %c0_4 = arith.constant 0 : index
    %3 = vector.load %arg3[%c0_3, %c0_4] : memref<1x4xf32, #tpu.memory_space<vmem>>, vector<1x4xf32>
    %4 = vector.broadcast %3 : vector<1x4xf32> to vector<256x4xf32>
    %5 = arith.addf %2, %4 : vector<256x4xf32>
    %c0_5 = arith.constant 0 : index
    %c0_6 = arith.constant 0 : index
    %6 = vector.load %arg4[%c0_5, %c0_6] : memref<256x4xf32, #tpu.memory_space<vmem>>, vector<256x4xf32>
    tpu.vector_store %arg4[%c0_5, %c0_6], %5 {strides = array<i32>} : memref<256x4xf32, #tpu.memory_space<vmem>>, vector<256x4xf32>,
    %c0_i32 = arith.constant 0 : i32
    %7 = arith.cmpi eq, %arg0, %c0_i32 : i32
    %8 = arith.extui %7 : i1 to i32
    %c0_i32_7 = arith.constant 0 : i32
    %9 = arith.cmpi ne, %8, %c0_i32_7 : i32
    scf.if %9 {
      %cst_18 = arith.constant 0.000000e+00 : f32
      %21 = vector.broadcast %cst_18 : f32 to vector<1x4xf32>
      %c0_19 = arith.constant 0 : index
      %c0_20 = arith.constant 0 : index
      %22 = vector.load %arg5[%c0_19, %c0_20] : memref<1x4xf32, #tpu.memory_space<vmem>>, vector<1x4xf32>
      tpu.vector_store %arg5[%c0_19, %c0_20], %21 {strides = array<i32>} : memref<1x4xf32, #tpu.memory_space<vmem>>, vector<1x4xf32>,
      %cst_21 = arith.constant 0.000000e+00 : f32
      %23 = vector.broadcast %cst_21 : f32 to vector<1x4xf32>
      %c0_22 = arith.constant 0 : index
      %c0_23 = arith.constant 0 : index
      %24 = vector.load %arg6[%c0_22, %c0_23] : memref<1x4xf32, #tpu.memory_space<vmem>>, vector<1x4xf32>
      tpu.vector_store %arg6[%c0_22, %c0_23], %23 {strides = array<i32>} : memref<1x4xf32, #tpu.memory_space<vmem>>, vector<1x4xf32>,
    } else {
    }
    %c0_8 = arith.constant 0 : index
    %c0_9 = arith.constant 0 : index
    %10 = vector.load %arg5[%c0_8, %c0_9] : memref<1x4xf32, #tpu.memory_space<vmem>>, vector<1x4xf32>
    %cst_10 = arith.constant dense<0.000000e+00> : vector<4xf32>
    %11 = vector.multi_reduction <add>, %5, %cst_10 [0] : vector<256x4xf32> to vector<4xf32>
    %12 = vector.shape_cast %11 : vector<4xf32> to vector<1x4xf32>
    %13 = arith.addf %10, %12 : vector<1x4xf32>
    %c0_11 = arith.constant 0 : index
    %c0_12 = arith.constant 0 : index
    %14 = vector.load %arg5[%c0_11, %c0_12] : memref<1x4xf32, #tpu.memory_space<vmem>>, vector<1x4xf32>
    tpu.vector_store %arg5[%c0_11, %c0_12], %13 {strides = array<i32>} : memref<1x4xf32, #tpu.memory_space<vmem>>, vector<1x4xf32>,
    %c0_13 = arith.constant 0 : index
    %c0_14 = arith.constant 0 : index
    %15 = vector.load %arg6[%c0_13, %c0_14] : memref<1x4xf32, #tpu.memory_space<vmem>>, vector<1x4xf32>
    %16 = arith.mulf %5, %5 : vector<256x4xf32>
    %cst_15 = arith.constant dense<0.000000e+00> : vector<4xf32>
    %17 = vector.multi_reduction <add>, %16, %cst_15 [0] : vector<256x4xf32> to vector<4xf32>
    %18 = vector.shape_cast %17 : vector<4xf32> to vector<1x4xf32>
    %19 = arith.addf %15, %18 : vector<1x4xf32>
    %c0_16 = arith.constant 0 : index
    %c0_17 = arith.constant 0 : index
    %20 = vector.load %arg6[%c0_16, %c0_17] : memref<1x4xf32, #tpu.memory_space<vmem>>, vector<1x4xf32>
    tpu.vector_store %arg6[%c0_16, %c0_17], %19 {strides = array<i32>} : memref<1x4xf32, #tpu.memory_space<vmem>>, vector<1x4xf32>,
    return
  }
  func.func @transform_0(%arg0: i32) -> (i32, i32) {
    %c0_i32 = arith.constant 0 : i32
    %c0_i32_0 = arith.constant 0 : i32
    return %arg0, %c0_i32 : i32, i32
  }
  func.func @transform_1(%arg0: i32) -> (i32, i32) {
    %c0_i32 = arith.constant 0 : i32
    %c0_i32_0 = arith.constant 0 : i32
    %c0_i32_1 = arith.constant 0 : i32
    return %c0_i32, %c0_i32_0 : i32, i32
  }
  func.func @transform_2(%arg0: i32) -> (i32, i32) {
    %c0_i32 = arith.constant 0 : i32
    %c0_i32_0 = arith.constant 0 : i32
    %c0_i32_1 = arith.constant 0 : i32
    return %c0_i32, %c0_i32_0 : i32, i32
  }
  func.func @transform_3(%arg0: i32) -> (i32, i32) {
    %c0_i32 = arith.constant 0 : i32
    %c0_i32_0 = arith.constant 0 : i32
    return %arg0, %c0_i32 : i32, i32
  }
  func.func @transform_4(%arg0: i32) -> (i32, i32) {
    %c0_i32 = arith.constant 0 : i32
    %c0_i32_0 = arith.constant 0 : i32
    %c0_i32_1 = arith.constant 0 : i32
    return %c0_i32, %c0_i32_0 : i32, i32
  }
  func.func @transform_5(%arg0: i32) -> (i32, i32) {
    %c0_i32 = arith.constant 0 : i32
    %c0_i32_0 = arith.constant 0 : i32
    %c0_i32_1 = arith.constant 0 : i32
    return %c0_i32, %c0_i32_0 : i32, i32
  }
}

</mosaic_0001>

<bundles_post_ra>
// kernel: tpu_custom_call.1
= control target key start
LH: loop header
LB: loop body
LE: loop exit
PB: predicated region body
PF: predicated region fallthrough
CT: control target
= control target key end

     0   :  { %11 = vsyncpa [#allocation3], 0  ;;  %s1620_s0 = inlined_call_operand.vmem [shape: bf16[512,27], index: 0, kind: input, shape index: {}]   ;;  %s1621_s1 = inlined_call_operand.vmem [shape: bf16[27,4], index: 1, kind: input, shape index: {}]   ;;  %s1622_s2 = inlined_call_operand.vmem [shape: f32[1,4], index: 2, kind: input, shape index: {}]   ;;  %s1623_s3 = inlined_call_operand.vmem [shape: f32[512,4], index: 3, kind: output, shape index: {0}]   ;;  %s1624_s4 = inlined_call_operand.hbm [shape: f32[1,4], index: 4, kind: output, shape index: {1}]   ;;  %s1625_s5 = inlined_call_operand.hbm [shape: f32[1,4], index: 5, kind: output, shape index: {2}]  }
   0x1   :  { %12 = vsyncpa [#allocation5], 0  ;;  %s1149_s18 = smov 0  }
   0x2 LB: > { %s1155_s19 = sadd.s32 4294967295, %s1113_s18   ;;  %p900_p0 = scmp.ge.s32.totalorder %s1113_s18, 1  ;;  %s1113_s18 = sphi %s1149_s18, %s18_s18  }
   0x3   : > { %p185_p1 = scmp.lt.s32.totalorder %s1113_s18, 3 }
   0x5   : > { %p186_p2 = pnand %p900_p0, %p185_p1 }
   0x6   : > { %v1029_v0 = vld [vmem:[%s1621_s1] sm:$0xff] (!%p186_p2)   ;;  %vm409_vm0 = vcmask (!%p186_p2), 1044480   ;;  %v1030_v1 = vld [vmem:[%s1621_s1 + $0x8] sm:$0x3f] (!%p186_p2)   ;;  %vm410_vm1 = vcmask (!%p186_p2), 1045504   ;;  %s901_s24 = sshll.u32 (!%p186_p2), %s1155_s19, 5 }
   0x7   : > { %189 = sbr.rel (%p186_p2) target bundleno = 384 (0x180), region = 32  ;;  %965 = vmatprep.subr.bf16.mxu0 (!%p186_p2), %v1029_v0  ;;  %1001 = vmatprep.subr.bf16.mxu1 (!%p186_p2), %v1029_v0  ;;  %v1115_v2 = vmov (!%p186_p2), 65535   ;;  %p214_p3 = scmp.lt.s32.totalorder (!%p186_p2), %s901_s24, 63  ;;  %vm360_vm2 = vcmask (!%p186_p2), 220160   ;;  %v1210_v22 = vld [vmem:[%s1622_s2] ss:$0 sm:$0xff] (!%p186_p2) }
   0x8   : > { %966 = vmatpush3.bf16.msra.mxu0 (!%p186_p2), %v1029_v0  ;;  %1003 = vmatpush3.bf16.msra.mxu1 (!%p186_p2), %v1029_v0  ;;  %v411_v3 = vsel (!%p186_p2), %vm409_vm0, 4294967295, %v1115_v2  ;;  %vm577_vm3 = vcmask (!%p186_p2), 31744   ;;  %p940_p4 = scmp.ne.s32.totalorder (!%p186_p2), %s1155_s19, 0 }
   0x9   : > { %v412_v4 = vsel (!%p186_p2), %vm410_vm1, %v411_v3, 0 }
   0xa   : > { %v414_v5 = vand.u32 (!%p186_p2), %v1030_v1, %v412_v4 }
   0xc   : > { %967 = vmatprep.subr.bf16.mxu0 (!%p186_p2), %v414_v5  ;;  %1002 = vmatprep.subr.bf16.mxu1 (!%p186_p2), %v414_v5 }
   0xd   : > { %968 = vmatpush3.bf16.msra.mxu0 (!%p186_p2), %v414_v5  ;;  %1004 = vmatpush3.bf16.msra.mxu1 (!%p186_p2), %v414_v5 }
   0xe   : > { %s1627_s24 = smov (!%p214_p3, %s901_s24), 63  ;;  %vm614_vm4 = vcmask (!%p940_p4), 24576  }
   0xf   : > { %s902_s25 = sshll.u32 %s1627_s24, 2  ;;  %s904_s29 = sshll.u32 %s1627_s24, 3 }
  0x10   : > { %s1172_s28 = scalar_lea.vmem %s1620_s0, %s902_s25  ;;  %s1215_s9 = scalar_lea.vmem %s1623_s3, %s904_s29 }
  0x11   : > { %v1031_v6 = vld [vmem:[%s1172_s28] sm:$0xff]   ;;  %v1033_v8 = vld [vmem:[%s1172_s28 + $0x8] sm:$0xff]   ;;  %v1035_v10 = vld [vmem:[%s1172_s28 + $0x10] sm:$0xff]  }
  0x12   : > { %v1032_v7 = vld [vmem:[%s1172_s28 + $0x40] sm:$0xff]   ;;  %969 = vmatprep.mubr.msk.bf16.mxu0 %vm360_vm2, %v1031_v6  ;;  %v1034_v9 = vld [vmem:[%s1172_s28 + $0x48] sm:$0xff]   ;;  %v1036_v11 = vld [vmem:[%s1172_s28 + $0x50] sm:$0xff]  }
  0x13   : > { %985 = vmatprep.mubr.msk.bf16.mxu1 %vm360_vm2, %v1032_v7  ;;  %970 = vmatmul.mubr.msk.bf16.vlgmr.msra.gmra.mrb[0].mxu0 %vm360_vm2, %v1033_v8  ;;  %v1037_v12 = vld [vmem:[%s1172_s28 + $0x18] sm:$0xff]   ;;  %v1039_v14 = vld [vmem:[%s1172_s28 + $0x20] sm:$0xff]   ;;  %v1041_v16 = vld [vmem:[%s1172_s28 + $0x28] sm:$0xff]  }
  0x14   : > { %986 = vmatmul.mubr.msk.bf16.vlgmr.msra.gmra.mrb[0].mxu1 %vm360_vm2, %v1034_v9  ;;  %973 = vmatprep.mubr.msk.bf16.mxu0 %vm360_vm2, %v1035_v10  ;;  %v1038_v13 = vld [vmem:[%s1172_s28 + $0x58] sm:$0xff]   ;;  %v1040_v15 = vld [vmem:[%s1172_s28 + $0x60] sm:$0xff]   ;;  %v1042_v17 = vld [vmem:[%s1172_s28 + $0x68] sm:$0xff]  }
  0x15   : > { %989 = vmatprep.mubr.msk.bf16.mxu1 %vm360_vm2, %v1036_v11  ;;  %v1043_v18 = vld [vmem:[%s1172_s28 + $0x30] sm:$0xff]   ;;  %v1045_v20 = vld [vmem:[%s1172_s28 + $0x38] sm:$0xff]  }
  0x16   : > { %v1044_v19 = vld [vmem:[%s1172_s28 + $0x70] sm:$0xff]   ;;  %v1046_v21 = vld [vmem:[%s1172_s28 + $0x78] sm:$0xff]  }
  0x1b   : > { %974 = vmatmul.mubr.msk.bf16.gmra.mrb[4].mxu0 %vm360_vm2, %v1037_v12 }
  0x1c   : > { %990 = vmatmul.mubr.msk.bf16.gmra.mrb[4].mxu1 %vm360_vm2, %v1038_v13  ;;  %977 = vmatprep.mubr.msk.bf16.mxu0 %vm360_vm2, %v1039_v14 }
  0x1d   : > { %993 = vmatprep.mubr.msk.bf16.mxu1 %vm360_vm2, %v1040_v15 }
  0x23   : > { %978 = vmatmul.mubr.msk.bf16.gmra.mrb[8].mxu0 %vm360_vm2, %v1041_v16 }
  0x24   : > { %994 = vmatmul.mubr.msk.bf16.gmra.mrb[8].mxu1 %vm360_vm2, %v1042_v17  ;;  %981 = vmatprep.mubr.msk.bf16.mxu0 %vm360_vm2, %v1043_v18 }
  0x25   : > { %997 = vmatprep.mubr.msk.bf16.mxu1 %vm360_vm2, %v1044_v19 }
  0x2b   : > { %982 = vmatmul.mubr.msk.bf16.gmra.mrb[12].mxu0 %vm360_vm2, %v1045_v20 }
  0x2c   : > { %998 = vmatmul.mubr.msk.bf16.gmra.mrb[12].mxu1 %vm360_vm2, %v1046_v21 }
  0xe6   : > { %v971_v23 = vpop.f32.mrb[0].mxu0 }
  0xe7   : > { %v1218_v24 = vadd.f32 %v971_v23, %v1210_v22  ;;  %v987_v25 = vpop.f32.mrb[0].mxu1  ;;  %v450_v26 = vpop.f32.mrb[1].mxu0 }
  0xe8   : > { %v1221_v27 = vadd.f32 %v987_v25, %v1210_v22  ;;  %v1224_v28 = vadd.f32 %v1210_v22, %v450_v26  ;;  %v514_v29 = vpop.f32.mrb[1].mxu1  ;;  %v972_v30 = vpop.f32.mrb[2].mxu0  ;;  %v1116_v25 = vmov (!%p940_p4), 0.0  }
  0xe9   : > { %580 = vst.msk [vmem:[%s1215_s9 + $0x10] sm:$0xff] %vm577_vm3, %v1218_v24  ;;  %v1230_v31 = vadd.f32 %v1210_v22, %v514_v29  ;;  %v1233_v32 = vadd.f32 %v972_v30, %v1210_v22  ;;  %v988_v33 = vpop.f32.mrb[2].mxu1  ;;  %v453_v34 = vpop.f32.mrb[3].mxu0 }
  0xea   : > { %596 = vst.msk [vmem:[%s1215_s9 + $0x90] sm:$0xff] %vm577_vm3, %v1221_v27  ;;  %578 = vst.msk [vmem:[%s1215_s9] sm:$0xff] %vm577_vm3, %v1224_v28  ;;  %v1242_v35 = vadd.f32 %v988_v33, %v1210_v22  ;;  %v1245_v36 = vadd.f32 %v1210_v22, %v453_v34  ;;  %v517_v37 = vpop.f32.mrb[3].mxu1 }
  0xeb   : > { %594 = vst.msk [vmem:[%s1215_s9 + $0x80] sm:$0xff] %vm577_vm3, %v1230_v31  ;;  %581 = vst.msk [vmem:[%s1215_s9 + $0x18] sm:$0xff] %vm577_vm3, %v1233_v32  ;;  %v1254_v38 = vadd.f32 %v1210_v22, %v517_v37 }
  0xec   : > { %597 = vst.msk [vmem:[%s1215_s9 + $0x98] sm:$0xff] %vm577_vm3, %v1242_v35  ;;  %579 = vst.msk [vmem:[%s1215_s9 + $0x8] sm:$0xff] %vm577_vm3, %v1245_v36 }
  0xed   : > { %595 = vst.msk [vmem:[%s1215_s9 + $0x88] sm:$0xff] %vm577_vm3, %v1254_v38 }
  0xee   : > { %v975_v39 = vpop.f32.mrb[4].mxu0  ;;  %615 = vst.msk [vmem:[#allocation2] sm:$0x1] (!%p940_p4), %vm614_vm4, %v1116_v25  ;;  %616 = vst.msk [vmem:[#allocation4] sm:$0x1] (!%p940_p4), %vm614_vm4, %v1116_v25 }
  0xef   : > { %v1266_v40 = vadd.f32 %v975_v39, %v1210_v22  ;;  %v991_v41 = vpop.f32.mrb[4].mxu1  ;;  %v466_v42 = vpop.f32.mrb[5].mxu0 }
  0xf0   : > { %v1269_v43 = vadd.f32 %v991_v41, %v1210_v22  ;;  %v1272_v44 = vadd.f32 %v1210_v22, %v466_v42  ;;  %v530_v45 = vpop.f32.mrb[5].mxu1  ;;  %v976_v46 = vpop.f32.mrb[6].mxu0 }
  0xf1   : > { %584 = vst.msk [vmem:[%s1215_s9 + $0x30] sm:$0xff] %vm577_vm3, %v1266_v40  ;;  %v1278_v47 = vadd.f32 %v1210_v22, %v530_v45  ;;  %v1281_v48 = vadd.f32 %v976_v46, %v1210_v22  ;;  %v992_v49 = vpop.f32.mrb[6].mxu1  ;;  %v469_v50 = vpop.f32.mrb[7].mxu0 }
  0xf2   : > { %600 = vst.msk [vmem:[%s1215_s9 + $0xb0] sm:$0xff] %vm577_vm3, %v1269_v43  ;;  %582 = vst.msk [vmem:[%s1215_s9 + $0x20] sm:$0xff] %vm577_vm3, %v1272_v44  ;;  %v1290_v51 = vadd.f32 %v992_v49, %v1210_v22  ;;  %v1293_v52 = vadd.f32 %v1210_v22, %v469_v50  ;;  %v533_v53 = vpop.f32.mrb[7].mxu1 }
  0xf3   : > { %598 = vst.msk [vmem:[%s1215_s9 + $0xa0] sm:$0xff] %vm577_vm3, %v1278_v47  ;;  %585 = vst.msk [vmem:[%s1215_s9 + $0x38] sm:$0xff] %vm577_vm3, %v1281_v48  ;;  %v1302_v54 = vadd.f32 %v1210_v22, %v533_v53 }
  0xf4   : > { %601 = vst.msk [vmem:[%s1215_s9 + $0xb8] sm:$0xff] %vm577_vm3, %v1290_v51  ;;  %583 = vst.msk [vmem:[%s1215_s9 + $0x28] sm:$0xff] %vm577_vm3, %v1293_v52 }
  0xf5   : > { %599 = vst.msk [vmem:[%s1215_s9 + $0xa8] sm:$0xff] %vm577_vm3, %v1302_v54 }
  0xf6   : > { %v979_v55 = vpop.f32.mrb[8].mxu0 }
  0xf7   : > { %v1314_v56 = vadd.f32 %v979_v55, %v1210_v22  ;;  %v995_v57 = vpop.f32.mrb[8].mxu1  ;;  %v482_v58 = vpop.f32.mrb[9].mxu0 }
  0xf8   : > { %v1317_v59 = vadd.f32 %v995_v57, %v1210_v22  ;;  %v1320_v60 = vadd.f32 %v1210_v22, %v482_v58  ;;  %v546_v61 = vpop.f32.mrb[9].mxu1  ;;  %v980_v62 = vpop.f32.mrb[10].mxu0 }
  0xf9   : > { %588 = vst.msk [vmem:[%s1215_s9 + $0x50] sm:$0xff] %vm577_vm3, %v1314_v56  ;;  %v1326_v63 = vadd.f32 %v1210_v22, %v546_v61  ;;  %v1329_v0 = vadd.f32 %v980_v62, %v1210_v22  ;;  %v996_v1 = vpop.f32.mrb[10].mxu1  ;;  %v485_v2 = vpop.f32.mrb[11].mxu0 }
  0xfa   : > { %604 = vst.msk [vmem:[%s1215_s9 + $0xd0] sm:$0xff] %vm577_vm3, %v1317_v59  ;;  %586 = vst.msk [vmem:[%s1215_s9 + $0x40] sm:$0xff] %vm577_vm3, %v1320_v60  ;;  %v1338_v3 = vadd.f32 %v996_v1, %v1210_v22  ;;  %v1341_v4 = vadd.f32 %v1210_v22, %v485_v2  ;;  %v549_v5 = vpop.f32.mrb[11].mxu1 }
  0xfb   : > { %602 = vst.msk [vmem:[%s1215_s9 + $0xc0] sm:$0xff] %vm577_vm3, %v1326_v63  ;;  %589 = vst.msk [vmem:[%s1215_s9 + $0x58] sm:$0xff] %vm577_vm3, %v1329_v0  ;;  %v1350_v6 = vadd.f32 %v1210_v22, %v549_v5 }
  0xfc   : > { %605 = vst.msk [vmem:[%s1215_s9 + $0xd8] sm:$0xff] %vm577_vm3, %v1338_v3  ;;  %587 = vst.msk [vmem:[%s1215_s9 + $0x48] sm:$0xff] %vm577_vm3, %v1341_v4 }
  0xfd   : > { %603 = vst.msk [vmem:[%s1215_s9 + $0xc8] sm:$0xff] %vm577_vm3, %v1350_v6 }
  0xfe   : > { %v983_v7 = vpop.f32.mrb[12].mxu0 }
  0xff   : > { %v1362_v8 = vadd.f32 %v983_v7, %v1210_v22  ;;  %v999_v9 = vpop.f32.mrb[12].mxu1  ;;  %v498_v10 = vpop.f32.mrb[13].mxu0  ;;  %613 = sbr.rel (%p940_p4) target bundleno = 262 (0x106), region = 36 }
 0x100   : > { %v1365_v11 = vadd.f32 %v999_v9, %v1210_v22  ;;  %v1368_v12 = vadd.f32 %v1210_v22, %v498_v10  ;;  %v562_v13 = vpop.f32.mrb[13].mxu1  ;;  %v984_v14 = vpop.f32.mrb[14].mxu0 }
 0x101   : > { %592 = vst.msk [vmem:[%s1215_s9 + $0x70] sm:$0xff] %vm577_vm3, %v1362_v8  ;;  %v1374_v15 = vadd.f32 %v1210_v22, %v562_v13  ;;  %v1377_v16 = vadd.f32 %v984_v14, %v1210_v22  ;;  %v1000_v17 = vpop.f32.mrb[14].mxu1  ;;  %v501_v18 = vpop.f32.mrb[15].mxu0 }
 0x102   : > { %608 = vst.msk [vmem:[%s1215_s9 + $0xf0] sm:$0xff] %vm577_vm3, %v1365_v11  ;;  %590 = vst.msk [vmem:[%s1215_s9 + $0x60] sm:$0xff] %vm577_vm3, %v1368_v12  ;;  %v1386_v19 = vadd.f32 %v1000_v17, %v1210_v22  ;;  %v1389_v20 = vadd.f32 %v1210_v22, %v501_v18  ;;  %v565_v21 = vpop.f32.mrb[15].mxu1 }
 0x103   : > { %606 = vst.msk [vmem:[%s1215_s9 + $0xe0] sm:$0xff] %vm577_vm3, %v1374_v15  ;;  %593 = vst.msk [vmem:[%s1215_s9 + $0x78] sm:$0xff] %vm577_vm3, %v1377_v16  ;;  %v1398_v23 = vadd.f32 %v1210_v22, %v565_v21 }
 0x104   : > { %609 = vst.msk [vmem:[%s1215_s9 + $0xf8] sm:$0xff] %vm577_vm3, %v1386_v19  ;;  %591 = vst.msk [vmem:[%s1215_s9 + $0x68] sm:$0xff] %vm577_vm3, %v1389_v20 }
 0x105   : > { %607 = vst.msk [vmem:[%s1215_s9 + $0xe8] sm:$0xff] %vm577_vm3, %v1398_v23 }
 0x106 PF: > { %v618_v22 = vsel %vm577_vm3, %v1224_v28, 0.0  ;;  %v619_v26 = vsel %vm577_vm3, %v1245_v36, 0.0  ;;  %v621_v29 = vsel %vm577_vm3, %v1218_v24, 0.0  ;;  %v623_v33 = vsel %vm577_vm3, %v1233_v32, 0.0  ;;  %s1117_s10 = smov [#allocation2]   ;;  %p1013_p5 = scmp.eq.s32.totalorder %s1155_s19, 1 }
 0x107   : > { %v620_v30 = vadd.f32 %v619_v26, %v618_v22  ;;  %v625_v37 = vsel %vm577_vm3, %v1272_v44, 0.0  ;;  %v627_v41 = vsel %vm577_vm3, %v1293_v52, 0.0  ;;  %v629_v45 = vsel %vm577_vm3, %v1266_v40, 0.0  ;;  %s810_s11 = sshll.u32 %s1117_s10, 4  ;;  %s811_s11 = int_to_ptr.vmem [resolvable:$true] %s810_s11 }
 0x108   : > { %v631_v49 = vsel %vm577_vm3, %v1281_v48, 0.0  ;;  %v633_v53 = vsel %vm577_vm3, %v1320_v60, 0.0  ;;  %v635_v57 = vsel %vm577_vm3, %v1341_v4, 0.0  ;;  %v691_v58 = vmul.f32 %v1224_v28, %v1224_v28  ;;  %s1047_s12 = scalar_lea.vmem %s811_s11, 16  ;;  %s1053_s13 = scalar_lea.vmem %s811_s11, 32 }
 0x109   : > { %v622_v34 = vadd.f32 %v621_v29, %v620_v30  ;;  %v692_v61 = vmul.f32 %v1245_v36, %v1245_v36  ;;  %v693_v1 = vmul.f32 %v1218_v24, %v1218_v24  ;;  %v637_v2 = vsel %vm577_vm3, %v1314_v56, 0.0  ;;  %p1048_p6 = scmp.ne.s32.totalorder %s811_s11, %s1047_s12  ;;  %p1054_p9 = scmp.lt.s32.totalorder %s811_s11, %s811_s11 }
 0x10a   : > { %v694_v5 = vmul.f32 %v1233_v32, %v1233_v32  ;;  %v639_v9 = vsel %vm577_vm3, %v1329_v0, 0.0  ;;  %v695_v28 = vmul.f32 %v1272_v44, %v1272_v44  ;;  %v723_v10 = vsel %vm577_vm3, %v691_v58, 0.0  ;;  %p1055_p10 = scmp.lt.s32.totalorder %s1053_s13, %s1047_s12 }
 0x10b   : > { %v624_v39 = vadd.f32 %v623_v33, %v622_v34  ;;  %v724_v36 = vsel %vm577_vm3, %v692_v61, 0.0  ;;  %v726_v24 = vsel %vm577_vm3, %v693_v1, 0.0  ;;  %v641_v17 = vsel %vm577_vm3, %v1368_v12, 0.0  ;;  %p1049_p7 = pnand %p1048_p6, %p1013_p5 }
 0x10c   : > { %v725_v14 = vadd.f32 %v724_v36, %v723_v10  ;;  %v696_v32 = vmul.f32 %v1293_v52, %v1293_v52  ;;  %v728_v18 = vsel %vm577_vm3, %v694_v5, 0.0  ;;  %v643_v44 = vsel %vm577_vm3, %v1389_v20, 0.0  ;;  %p1056_p11 = por %p1055_p10, %p1054_p9 }
 0x10d   : > { %v626_v42 = vadd.f32 %v625_v37, %v624_v39  ;;  %v697_v22 = vmul.f32 %v1266_v40, %v1266_v40  ;;  %v730_v26 = vsel %vm577_vm3, %v695_v28, 0.0  ;;  %v645_v33 = vsel %vm577_vm3, %v1362_v8, 0.0  ;;  %p1050_p8 = pneg %p1049_p7 }
 0x10e   : > { %v727_v25 = vadd.f32 %v726_v24, %v725_v14  ;;  %v698_v52 = vmul.f32 %v1281_v48, %v1281_v48  ;;  %v732_v34 = vsel %vm577_vm3, %v696_v32, 0.0  ;;  %v699_v40 = vmul.f32 %v1320_v60, %v1320_v60 }
 0x10f   : > { %v628_v46 = vadd.f32 %v627_v41, %v626_v42  ;;  %v647_v41 = vsel %vm577_vm3, %v1377_v16, 0.0  ;;  %v734_v42 = vsel %vm577_vm3, %v697_v22, 0.0  ;;  %v700_v48 = vmul.f32 %v1341_v4, %v1341_v4  ;;  %p1057_p12 = pnand %p1056_p11, %p1050_p8 }
 0x110   : > { %v729_v30 = vadd.f32 %v728_v18, %v727_v25  ;;  %v701_v60 = vmul.f32 %v1314_v56, %v1314_v56  ;;  %v738_v58 = vsel %vm577_vm3, %v699_v40, 0.0  ;;  %v653_v1 = vsel %vm577_vm3, %v1221_v27, 0.0 }
 0x111   : > { %v630_v50 = vadd.f32 %v629_v45, %v628_v46  ;;  %v702_v4 = vmul.f32 %v1329_v0, %v1329_v0  ;;  %v703_v56 = vmul.f32 %v1368_v12, %v1368_v12  ;;  %v704_v0 = vmul.f32 %v1389_v20, %v1389_v20 }
 0x112   : > { %v731_v39 = vadd.f32 %v730_v26, %v729_v30  ;;  %v742_v28 = vsel %vm577_vm3, %v701_v60, 0.0  ;;  %v659_v32 = vsel %vm577_vm3, %v1302_v54, 0.0  ;;  %v705_v12 = vmul.f32 %v1362_v8, %v1362_v8 }
 0x113   : > { %v632_v55 = vadd.f32 %v631_v49, %v630_v50  ;;  %v649_v49 = vsel %vm577_vm3, %v1230_v31, 0.0  ;;  %v736_v50 = vsel %vm577_vm3, %v698_v52, 0.0  ;;  %v744_v14 = vsel %vm577_vm3, %v702_v4, 0.0 }
 0x114   : > { %v733_v46 = vadd.f32 %v732_v34, %v731_v39  ;;  %v746_v18 = vsel %vm577_vm3, %v703_v56, 0.0  ;;  %v706_v20 = vmul.f32 %v1377_v16, %v1377_v16  ;;  %v748_v22 = vsel %vm577_vm3, %v704_v0, 0.0 }
 0x115   : > { %v634_v62 = vadd.f32 %v633_v53, %v632_v55  ;;  %v663_v30 = vsel %vm577_vm3, %v1290_v51, 0.0  ;;  %v707_v8 = vmul.f32 %v1230_v31, %v1230_v31  ;;  %v708_v16 = vmul.f32 %v1254_v38, %v1254_v38 }
 0x116   : > { %v735_v55 = vadd.f32 %v734_v42, %v733_v46  ;;  %v752_v39 = vsel %vm577_vm3, %v706_v20, 0.0  ;;  %v667_v42 = vsel %vm577_vm3, %v1350_v6, 0.0  ;;  %v709_v31 = vmul.f32 %v1221_v27, %v1221_v27 }
 0x117   : > { %v636_v7 = vadd.f32 %v635_v57, %v634_v62  ;;  %v651_v57 = vsel %vm577_vm3, %v1254_v38, 0.0  ;;  %v710_v38 = vmul.f32 %v1242_v35, %v1242_v35  ;;  %v711_v27 = vmul.f32 %v1278_v47, %v1278_v47 }
 0x118   : > { %v737_v62 = vadd.f32 %v736_v50, %v735_v55  ;;  %v756_v50 = vsel %vm577_vm3, %v708_v16, 0.0  ;;  %v758_v60 = vsel %vm577_vm3, %v709_v31, 0.0  ;;  %v679_v0 = vsel %vm577_vm3, %v1386_v19, 0.0 }
 0x119   : > { %v638_v13 = vadd.f32 %v637_v2, %v636_v7  ;;  %v740_v2 = vsel %vm577_vm3, %v700_v48, 0.0  ;;  %v669_v48 = vsel %vm577_vm3, %v1317_v59, 0.0  ;;  %vm688_vm5 = vcmask 24576  }
 0x11a   : > { %v739_v7 = vadd.f32 %v738_v58, %v737_v62  ;;  %v673_v62 = vsel %vm577_vm3, %v1374_v15, 0.0 }
 0x11b   : > { %v640_v21 = vadd.f32 %v639_v9, %v638_v13  ;;  %v655_v9 = vsel %vm577_vm3, %v1242_v35, 0.0  ;;  %v657_v13 = vsel %vm577_vm3, %v1278_v47, 0.0  ;;  %v712_v35 = vmul.f32 %v1302_v54, %v1302_v54 }
 0x11c   : > { %v741_v36 = vadd.f32 %v740_v2, %v739_v7  ;;  %v713_v47 = vmul.f32 %v1269_v43, %v1269_v43  ;;  %v762_v7 = vsel %vm577_vm3, %v711_v27, 0.0  ;;  %v714_v54 = vmul.f32 %v1290_v51, %v1290_v51 }
 0x11d   : > { %v642_v29 = vadd.f32 %v641_v17, %v640_v21 }
 0x11e   : > { %v743_v17 = vadd.f32 %v742_v28, %v741_v36  ;;  %v677_v28 = vsel %vm577_vm3, %v1365_v11, 0.0 }
 0x11f   : > { %v644_v37 = vadd.f32 %v643_v44, %v642_v29  ;;  %v661_v44 = vsel %vm577_vm3, %v1269_v43, 0.0  ;;  %v715_v43 = vmul.f32 %v1326_v63, %v1326_v63 }
 0x120   : > { %v745_v25 = vadd.f32 %v744_v14, %v743_v17  ;;  %v766_v14 = vsel %vm577_vm3, %v713_v47, 0.0 }
 0x121   : > { %v646_v45 = vadd.f32 %v645_v33, %v644_v37  ;;  %v750_v33 = vsel %vm577_vm3, %v705_v12, 0.0  ;;  %v665_v37 = vsel %vm577_vm3, %v1326_v63, 0.0  ;;  %v768_v12 = vsel %vm577_vm3, %v714_v54, 0.0 }
 0x122   : > { %v747_v29 = vadd.f32 %v746_v18, %v745_v25  ;;  %v770_v25 = vsel %vm577_vm3, %v715_v43, 0.0  ;;  %v718_v63 = vmul.f32 %v1338_v3, %v1338_v3 }
 0x123   : > { %v648_v53 = vadd.f32 %v647_v41, %v646_v45  ;;  %v754_v45 = vsel %vm577_vm3, %v707_v8, 0.0 }
 0x124   : > { %v749_v34 = vadd.f32 %v748_v22, %v747_v29 }
 0x125   : > { %v650_v61 = vadd.f32 %v649_v49, %v648_v53 }
 0x126   : > { %v751_v40 = vadd.f32 %v750_v33, %v749_v34 }
 0x127   : > { %v652_v5 = vadd.f32 %v651_v57, %v650_v61  ;;  %v671_v57 = vsel %vm577_vm3, %v1338_v3, 0.0  ;;  %v721_v3 = vmul.f32 %v1365_v11, %v1365_v11 }
 0x128   : > { %v753_v49 = vadd.f32 %v752_v39, %v751_v40  ;;  %v722_v40 = vmul.f32 %v1386_v19, %v1386_v19 }
 0x129   : > { %v654_v10 = vadd.f32 %v653_v1, %v652_v5  ;;  %v760_v1 = vsel %vm577_vm3, %v710_v38, 0.0  ;;  %v675_v5 = vsel %vm577_vm3, %v1398_v23, 0.0 }
 0x12a   : > { %v755_v55 = vadd.f32 %v754_v45, %v753_v49  ;;  %v782_v45 = vsel %vm577_vm3, %v721_v3, 0.0  ;;  %v784_v49 = vsel %vm577_vm3, %v722_v40, 0.0 }
 0x12b   : > { %v656_v24 = vadd.f32 %v655_v9, %v654_v10  ;;  %v764_v10 = vsel %vm577_vm3, %v712_v35, 0.0 }
 0x12c   : > { %v757_v61 = vadd.f32 %v756_v50, %v755_v55 }
 0x12d   : > { %v658_v21 = vadd.f32 %v657_v13, %v656_v24 }
 0x12e   : > { %v759_v2 = vadd.f32 %v758_v60, %v757_v61 }
 0x12f   : > { %v660_v26 = vadd.f32 %v659_v32, %v658_v21  ;;  %v716_v32 = vmul.f32 %v1350_v6, %v1350_v6  ;;  %v717_v21 = vmul.f32 %v1317_v59, %v1317_v59  ;;  %v719_v6 = vmul.f32 %v1374_v15, %v1374_v15  ;;  %v617_v15 = vld [vmem:[#allocation2] sm:$0x1] }
 0x130   : > { %v761_v56 = vadd.f32 %v760_v1, %v759_v2  ;;  %v720_v59 = vmul.f32 %v1398_v23, %v1398_v23 }
 0x131   : > { %v662_v52 = vadd.f32 %v661_v44, %v660_v26  ;;  %v772_v22 = vsel %vm577_vm3, %v716_v32, 0.0  ;;  %v778_v16 = vsel %vm577_vm3, %v719_v6, 0.0 }
 0x132   : > { %v763_v13 = vadd.f32 %v762_v7, %v761_v56 }
 0x133   : > { %v664_v41 = vadd.f32 %v663_v30, %v662_v52  ;;  %v774_v30 = vsel %vm577_vm3, %v717_v21, 0.0  ;;  %v776_v52 = vsel %vm577_vm3, %v718_v63, 0.0 }
 0x134   : > { %v765_v17 = vadd.f32 %v764_v10, %v763_v13 }
 0x135   : > { %v666_v46 = vadd.f32 %v665_v37, %v664_v41 }
 0x136   : > { %v767_v18 = vadd.f32 %v766_v14, %v765_v17 }
 0x137   : > { %v668_v53 = vadd.f32 %v667_v42, %v666_v46  ;;  %v780_v42 = vsel %vm577_vm3, %v720_v59, 0.0 }
 0x138   : > { %v769_v20 = vadd.f32 %v768_v12, %v767_v18 }
 0x139   : > { %v670_v58 = vadd.f32 %v669_v48, %v668_v53 }
 0x13a   : > { %v771_v29 = vadd.f32 %v770_v25, %v769_v20 }
 0x13b   : > { %v672_v4 = vadd.f32 %v671_v57, %v670_v58 }
 0x13c   : > { %v773_v33 = vadd.f32 %v772_v22, %v771_v29 }
 0x13d   : > { %v674_v9 = vadd.f32 %v673_v62, %v672_v4 }
 0x13e   : > { %v775_v37 = vadd.f32 %v774_v30, %v773_v33 }
 0x13f   : > { %v676_v36 = vadd.f32 %v675_v5, %v674_v9 }
 0x140   : > { %v777_v41 = vadd.f32 %v776_v52, %v775_v37 }
 0x141   : > { %v678_v24 = vadd.f32 %v677_v28, %v676_v36 }
 0x142   : > { %v779_v31 = vadd.f32 %v778_v16, %v777_v41 }
 0x143   : > { %v680_v51 = vadd.f32 %v679_v0, %v678_v24 }
 0x144   : > { %v781_v46 = vadd.f32 %v780_v42, %v779_v31 }
 0x145   : > { %v681_v44 = vrot.slane %v680_v51, 4 }
 0x146   : > { %v783_v48 = vadd.f32 %v782_v45, %v781_v46 }
 0x147   : > { %v682_v26 = vadd.f32 %v681_v44, %v680_v51 }
 0x149   : > { %v683_v8 = vrot.slane %v682_v26, 2 }
 0x14b   : > { %v684_v34 = vadd.f32 %v683_v8, %v682_v26 }
 0x14d   : > { %v685_v39 = vrot.slane %v684_v34, 1 }
 0x14f   : > { %v686_v23 = vadd.f32 %v685_v39, %v684_v34 }
 0x151   : > { %v687_v11 = vadd.f32 %v686_v23, %v617_v15 }
 0x153   : > { %689 = vst.msk [vmem:[#allocation2] sm:$0x1] %vm688_vm5, %v687_v11 }
 0x154   : > { %1060 = shalt.err (!%p1057_p12)
}
 0x155   : > { %s1061_s16 = scalar_lea.hbm %s1624_s4, 16 }
 0x156   : > { %p1062_p13 = scmp.ne.s32.totalorder %s1624_s4, %s1061_s16  ;;  %p1067_p2 = scmp.lt.u32.totalorder %s1061_s16, %s1624_s4 }
 0x158   : > { %p1063_p0 = pnand %p1062_p13, %p1013_p5 }
 0x15a   : > { %p1064_p1 = pneg %p1063_p0 }
 0x15c   : > { %p1069_p3 = pnand %p1067_p2, %p1064_p1 }
 0x15e   : > { %1072 = shalt.err (!%p1069_p3)
}
 0x15f   : > { %1006 = dma.vmem_to_hbm [thread:$0]  (%p1013_p5), %s811_s11, 16, %s1624_s4, [#allocation3]   ;;  %v785_v19 = vadd.f32 %v784_v49, %v783_v48  ;;  %v690_v27 = vld [vmem:[#allocation4] sm:$0x1] }
 0x160   : > { %s1118_s25 = smov [#allocation4]  }
 0x161   : > { %v786_v38 = vrot.slane %v785_v19, 4  ;;  %s821_s26 = sshll.u32 %s1118_s25, 4  ;;  %s822_s26 = int_to_ptr.vmem [resolvable:$true] %s821_s26 }
 0x162   : > { %s1073_s27 = scalar_lea.vmem %s822_s26, 16  ;;  %s1079_s28 = scalar_lea.vmem %s822_s26, 32 }
 0x163   : > { %v787_v50 = vadd.f32 %v786_v38, %v785_v19  ;;  %p1074_p4 = scmp.ne.s32.totalorder %s822_s26, %s1073_s27  ;;  %p1080_p8 = scmp.lt.s32.totalorder %s822_s26, %s822_s26 }
 0x164   : > { %p1081_p9 = scmp.lt.s32.totalorder %s1079_s28, %s1073_s27 }
 0x165   : > { %v788_v53 = vrot.slane %v787_v50, 2  ;;  %p1075_p6 = pnand %p1074_p4, %p1013_p5 }
 0x166   : > { %p1082_p10 = por %p1081_p9, %p1080_p8 }
 0x167   : > { %v789_v55 = vadd.f32 %v788_v53, %v787_v50  ;;  %p1076_p7 = pneg %p1075_p6 }
 0x169   : > { %v790_v57 = vrot.slane %v789_v55, 1  ;;  %p1083_p11 = pnand %p1082_p10, %p1076_p7 }
 0x16b   : > { %v791_v60 = vadd.f32 %v790_v57, %v789_v55 }
 0x16d   : > { %v792_v58 = vadd.f32 %v791_v60, %v690_v27 }
 0x16f   : > { %793 = vst.msk [vmem:[#allocation4] sm:$0x1] %vm688_vm5, %v792_v58 }
 0x170   : > { %1086 = shalt.err (!%p1083_p11)
}
 0x171   : > { %s1087_s6 = scalar_lea.hbm %s1625_s5, 16 }
 0x172   : > { %p1088_p12 = scmp.ne.s32.totalorder %s1625_s5, %s1087_s6  ;;  %p1093_p1 = scmp.lt.u32.totalorder %s1087_s6, %s1625_s5 }
 0x174   : > { %p1089_p13 = pnand %p1088_p12, %p1013_p5 }
 0x176   : > { %p1090_p0 = pneg %p1089_p13 }
 0x178   : > { %p1095_p2 = pnand %p1093_p1, %p1090_p0 }
 0x17a   : > { %1098 = shalt.err (!%p1095_p2)
}
 0x17b   : > { %1008 = dma.vmem_to_hbm [thread:$0]  (%p1013_p5), %s822_s26, 16, %s1625_s5, [#allocation5]  }
 0x17c   : > { %1104 = dma.done.wait (%p1013_p5), [#allocation3], 16  }
 0x17d   : > { %1106 = vsyncadd (%p1013_p5), [#allocation3], 4294967280 }
 0x17e   : > { %1108 = dma.done.wait (%p1013_p5), [#allocation5], 16  }
 0x17f   : > { %1110 = vsyncadd (%p1013_p5), [#allocation5], 4294967280 }
 0x180 PF: > { %s18_s18 = sadd.s32 1, %s1113_s18  }
 0x181   : > { %p15_p3 = scmp.ge.s32.totalorder %s18_s18, 4  }
 0x183   :  { %17 = sbr.rel (!%p15_p3) target bundleno = 2 (0x2), region = 83 }
 0x18a   :  { %846 = vsyncpa [#allocation3], 1 }
 0x18b   :  { %848 = vsyncpa [#allocation3 + $0x1], 1 }
 0x18c   :  { %849 = vsyncpa [#allocation5], 1 }

</bundles_post_ra>
